<compile_context>
chip_gen: v7x
topology: tpu7x:2x2x1
jax: 0.10.0
libtpu: 0.0.40
codegen_flags: <defaults>
</compile_context>

<pallas_src>
import functools

import jax
import jax.numpy as jnp
from jax import lax
from jax.experimental import pallas as pl
from jax.experimental.pallas import tpu as pltpu


# ----------------------------------------------------------------------------
# Kernel
# ----------------------------------------------------------------------------

def _channel_attention_kernel(x_ref, w1_ref, w2t_ref, o_ref, acc_ref, *,
                              hw, multi, mask_last):
    """Fused AdaptiveMaxPool2d(1) -> 1x1 conv -> ReLU -> 1x1 conv -> sigmoid.

    Grid: (n_batch_blocks, n_spatial_tiles); spatial axis is the reduction.
      x_ref   : (TB, C, T)   current spatial tile (lanes = T)
      w1_ref  : (Cr, C)      fc1 weight (C on lanes)
      w2t_ref : (Cr, C)      fc2 weight, transposed (C on lanes)
      o_ref   : (TB, 1, C)   sigmoid attention output (lane-dense, C on lanes)
      acc_ref : (TB, C, 128) lane-resident running max (VMEM scratch)
    """
    tb, c, t = x_ref.shape
    s = pl.program_id(1)

    def epilogue(pooled):                       # pooled: (TB, C) f32, C on lanes
        w1 = w1_ref[...]                        # (Cr, C)
        w2t = w2t_ref[...]                      # (Cr, C)
        # fc1 (1x1 conv, no bias): h[b, r] = sum_c w1[r, c] * pooled[b, c]
        # Tiny contraction -> VPU broadcast-multiply + reduce; MXU stays free.
        h = jnp.sum(pooled[:, None, :] * w1[None, :, :], axis=2)   # (TB, Cr)
        h = jnp.maximum(h, 0.0)                                    # ReLU
        # fc2: logits[b, c] = sum_r w2t[r, c] * h[b, r]   (lane-dense result)
        logits = jnp.sum(h[:, :, None] * w2t[None, :, :], axis=1)  # (TB, C)
        o_ref[...] = jax.nn.sigmoid(logits)[:, None, :].astype(o_ref.dtype)

    if not multi:
        # Whole H*W fits one lane-dense block: direct reduce, no accumulator.
        pooled = jnp.max(x_ref[...], axis=2).astype(jnp.float32)   # (TB, C)
        epilogue(pooled)
    else:
        neg = jnp.asarray(float(jnp.finfo(x_ref.dtype).min), x_ref.dtype)

        @pl.when(s == 0)
        def _init():
            acc_ref[...] = jnp.full(acc_ref.shape, neg, acc_ref.dtype)

        # Lane-resident running max: elementwise VPU maxima over the T/128
        # lane columns of this tile; no per-step cross-lane (XLU) reduce.
        n_cols = t // 128
        for g in range(n_cols):
            col = x_ref[:, :, g * 128:(g + 1) * 128]                # (TB, C, 128)
            if mask_last:
                lane = lax.broadcasted_iota(jnp.int32, col.shape, 2)
                col = jnp.where(s * t + g * 128 + lane < hw, col, neg)
            acc_ref[...] = jnp.maximum(acc_ref[...], col)

        @pl.when(s == pl.num_programs(1) - 1)
        def _finalize():
            pooled = jnp.max(acc_ref[...], axis=2).astype(jnp.float32)  # (TB, C)
            epilogue(pooled)


# ----------------------------------------------------------------------------
# Wrapper helpers
# ----------------------------------------------------------------------------

def _vmem_capacity_bytes():
    """Generation-aware VMEM capacity; conservative fallback (v7x per-TC)."""
    try:
        cap = int(pltpu.get_tpu_info().vmem_capacity_bytes)
        if cap > 0:
            return cap
    except Exception:
        pass
    return 64 << 20


def _pick_batch_tile(batch, max_tb):
    """Largest divisor of `batch` fitting VMEM while keeping >= 2 blocks on the
    parallel batch axis (megacore) whenever batch >= 2."""
    limit = min(max_tb, max(1, batch // 2)) if batch >= 2 else max_tb
    tb = 1
    for d in range(1, min(batch, max(1, limit)) + 1):
        if batch % d == 0:
            tb = d
    return tb


# ----------------------------------------------------------------------------
# Wrapper
# ----------------------------------------------------------------------------

def channel_attention(x_nchw, fc1_w, fc2_w, *, max_spatial_tile=None):
    """ChannelAttention.forward.

    x_nchw : (B, C, H, W) float32 or bfloat16 (NCHW)
    fc1_w  : (C//16, C, 1, 1)  Conv2d weight, no bias
    fc2_w  : (C, C//16, 1, 1)  Conv2d weight, no bias
    returns: (B, C, 1, 1) float32 sigmoid attention map
    max_spatial_tile : optional cap on the spatial tile (testing / tuning).
    """
    B, C, H, W = x_nchw.shape
    Cr = fc1_w.shape[0]
    assert fc1_w.shape[:2] == (Cr, C), fc1_w.shape
    assert fc2_w.shape[:2] == (C, Cr), fc2_w.shape

    HW = H * W
    x = x_nchw.reshape(B, C, HW)                 # contiguous reshape, no copy
    itemsize = jnp.dtype(x.dtype).itemsize

    # ---- spatial tile from the VMEM budget (double-buffered x block) --------
    cap = _vmem_capacity_bytes()
    x_buf_budget = min(cap // 5, 12 << 20)       # per single x buffer
    t_budget = max(128, x_buf_budget // (C * itemsize))
    t_cap = 8192                                 # roofline saturates ~1k lanes
    if max_spatial_tile is not None:
        t_cap = min(t_cap, int(max_spatial_tile))
    t_max = min(t_budget, t_cap)

    if HW <= t_max:
        T, n_s, multi, mask_last = HW, 1, False, False
    else:
        T = max(128, (t_max // 128) * 128)
        n_s = pl.cdiv(HW, T)
        multi = True
        mask_last = (HW % T) != 0

    # ---- batch folding (amortize per-step overhead on small feature maps) ---
    x_block_bytes = C * T * itemsize
    max_tb = max(1, x_buf_budget // x_block_bytes)
    tb = _pick_batch_tile(B, max_tb)
    n_b = B // tb

    # ---- weights, lane-dense (C on lanes) ------------------------------------
    w1 = fc1_w.reshape(Cr, C).astype(jnp.float32)                    # (Cr, C)
    w2t = jnp.transpose(fc2_w.reshape(C, Cr)).astype(jnp.float32)    # (Cr, C)

    # ---- x BlockSpec (deeper pipelining only for forced-small tiles) --------
    x_idx = lambda b, s: (b, 0, s)
    use_buffered = multi and n_s >= 3 and (tb * x_block_bytes) < (1 << 20)
    if use_buffered:
        try:
            x_spec = pl.BlockSpec((tb, C, T), x_idx, pipeline_mode=pl.Buffered(3))
        except TypeError:                         # older jax: no pipeline_mode
            use_buffered = False
            x_spec = pl.BlockSpec((tb, C, T), x_idx)
    else:
        x_spec = pl.BlockSpec((tb, C, T), x_idx)

    # ---- explicit scoped-VMEM limit (v5e default is only 16 MiB) ------------
    n_x_buf = 3 if use_buffered else 2
    needed = (n_x_buf * tb * C * T * itemsize       # pipelined x buffers
              + tb * C * 128 * itemsize             # lane-resident max scratch
              + 2 * (2 * Cr * C * 4)                # fc1 + fc2 weights
              + 2 * (tb * C * 4))                   # output buffers
    vmem_limit = max(needed + (8 << 20), 32 << 20)
    vmem_limit = int(min(vmem_limit, max(int(cap * 0.9), 32 << 20)))

    kernel = functools.partial(_channel_attention_kernel,
                               hw=HW, multi=multi, mask_last=mask_last)

    out = pl.pallas_call(
        kernel,
        out_shape=jax.ShapeDtypeStruct((B, 1, C), jnp.float32),
        grid=(n_b, n_s),
        in_specs=[
            x_spec,
            pl.BlockSpec((Cr, C), lambda b, s: (0, 0)),
            pl.BlockSpec((Cr, C), lambda b, s: (0, 0)),
        ],
        out_specs=pl.BlockSpec((tb, 1, C), lambda b, s: (b, 0, 0)),
        scratch_shapes=[pltpu.VMEM((tb, C, 128), x.dtype)],
        compiler_params=pltpu.CompilerParams(
            dimension_semantics=("parallel", "arbitrary"),
            vmem_limit_bytes=vmem_limit),
    )(x, w1, w2t)
    return out.reshape(B, C, 1, 1)


# ----------------------------------------------------------------------------
# Pure-JAX reference (for correctness check)
# ----------------------------------------------------------------------------

def channel_attention_ref(x, fc1_w, fc2_w):
    B, C, H, W = x.shape
    Cr = fc1_w.shape[0]
    pooled = jnp.max(x.astype(jnp.float32), axis=(2, 3))             # (B, C)
    h = jnp.maximum(pooled @ fc1_w.reshape(Cr, C).T, 0.0)            # (B, Cr)
    logits = h @ fc2_w.reshape(C, Cr).T                              # (B, C)
    return jax.nn.sigmoid(logits).reshape(B, C, 1, 1)


# ----------------------------------------------------------------------------
# Main
# ----------------------------------------------------------------------------

if __name__ == "__main__":
    key = jax.random.PRNGKey(0)
    kx, k1, k2 = jax.random.split(key, 3)

    B, C, H, W = 2, 32, 16, 16        # in_planes = 32 -> hidden = 32 // 16 = 2
    Cr = C // 16

    x = jax.random.normal(kx, (B, C, H, W), jnp.float32)
    fc1_w = jax.random.normal(k1, (Cr, C, 1, 1), jnp.float32) * 0.1
    fc2_w = jax.random.normal(k2, (C, Cr, 1, 1), jnp.float32) * 0.1

    # 1) Default (performance) path: whole 16x16 map in one lane-dense block.
    fwd = jax.jit(channel_attention)
    out = fwd(x, fc1_w, fc2_w)
    jax.block_until_ready(out)
    ref = channel_attention_ref(x, fc1_w, fc2_w)
    assert out.shape == (B, C, 1, 1), out.shape
    assert jnp.all(jnp.isfinite(out))
    assert jnp.allclose(out, ref, atol=1e-5, rtol=1e-5), \
        float(jnp.max(jnp.abs(out - ref)))

    # 2) Stress the tiled-reduction + ragged-mask + Buffered(3) path (NOT a
    #    perf config): H*W = 400 with a forced 128-lane tile -> 4 spatial
    #    steps, last one masked (only 16 valid lanes).
    x2 = jax.random.normal(kx, (B, C, 20, 20), jnp.float32)
    fwd2 = jax.jit(functools.partial(channel_attention, max_spatial_tile=128))
    out2 = fwd2(x2, fc1_w, fc2_w)
    jax.block_until_ready(out2)
    ref2 = channel_attention_ref(x2, fc1_w, fc2_w)
    assert jnp.allclose(out2, ref2, atol=1e-5, rtol=1e-5), \
        float(jnp.max(jnp.abs(out2 - ref2)))

    print("KERNEL_OK")
</pallas_src>

<mosaic_0001>
module attributes {stable_mosaic.version = 11 : i64} {
  func.func @_channel_attention_kernel(%arg0: i32, %arg1: i32, %arg2: memref<1x32x256xf32, #tpu.memory_space<vmem>>, %arg3: memref<2x32xf32, #tpu.memory_space<vmem>>, %arg4: memref<2x32xf32, #tpu.memory_space<vmem>>, %arg5: memref<1x1x32xf32, #tpu.memory_space<vmem>>, %arg6: memref<1x32x128xf32, #tpu.memory_space<vmem>>) attributes {dimension_semantics = [#tpu.dimension_semantics<parallel>, #tpu.dimension_semantics<arbitrary>], iteration_bounds = array<i64: 2, 1>, scalar_prefetch = 0 : i64, scratch_operands = 1 : i64, tpu.core_type = #tpu.core_type<tc>, window_params = [{transform_indices = @transform_0, window_bounds = array<i64: 1, 32, 256>}, {pipeline_mode = #tpu.pipeline_mode<synchronous>, transform_indices = @transform_1, window_bounds = array<i64: 2, 32>}, {pipeline_mode = #tpu.pipeline_mode<synchronous>, transform_indices = @transform_2, window_bounds = array<i64: 2, 32>}, {transform_indices = @transform_3, window_bounds = array<i64: 1, 1, 32>}]} {
    %c0 = arith.constant 0 : index
    %c0_0 = arith.constant 0 : index
    %c0_1 = arith.constant 0 : index
    %0 = vector.load %arg2[%c0, %c0_0, %c0_1] : memref<1x32x256xf32, #tpu.memory_space<vmem>>, vector<1x32x256xf32>
    %cst = arith.constant dense<0xFF800000> : vector<1x32xf32>
    %1 = vector.multi_reduction <maximumf>, %0, %cst [2] : vector<1x32x256xf32> to vector<1x32xf32>
    %c0_2 = arith.constant 0 : index
    %c0_3 = arith.constant 0 : index
    %2 = vector.load %arg3[%c0_2, %c0_3] : memref<2x32xf32, #tpu.memory_space<vmem>>, vector<2x32xf32>
    %c0_4 = arith.constant 0 : index
    %c0_5 = arith.constant 0 : index
    %3 = vector.load %arg4[%c0_4, %c0_5] : memref<2x32xf32, #tpu.memory_space<vmem>>, vector<2x32xf32>
    %4 = vector.shape_cast %1 : vector<1x32xf32> to vector<1x1x32xf32>
    %5 = vector.shape_cast %2 : vector<2x32xf32> to vector<1x2x32xf32>
    %6 = vector.broadcast %4 : vector<1x1x32xf32> to vector<1x2x32xf32>
    %7 = arith.mulf %6, %5 : vector<1x2x32xf32>
    %cst_6 = arith.constant dense<0.000000e+00> : vector<1x2xf32>
    %8 = vector.multi_reduction <add>, %7, %cst_6 [2] : vector<1x2x32xf32> to vector<1x2xf32>
    %cst_7 = arith.constant 0.000000e+00 : f32
    %9 = vector.broadcast %cst_7 : f32 to vector<1x2xf32>
    %10 = arith.maximumf %8, %9 : vector<1x2xf32>
    %11 = vector.shape_cast %10 : vector<1x2xf32> to vector<1x2x1xf32>
    %12 = vector.shape_cast %3 : vector<2x32xf32> to vector<1x2x32xf32>
    %13 = vector.broadcast %11 : vector<1x2x1xf32> to vector<1x2x32xf32>
    %14 = arith.mulf %13, %12 : vector<1x2x32xf32>
    %cst_8 = arith.constant dense<0.000000e+00> : vector<1x32xf32>
    %15 = vector.multi_reduction <add>, %14, %cst_8 [1] : vector<1x2x32xf32> to vector<1x32xf32>
    %16 = arith.negf %15 : vector<1x32xf32>
    %17 = math.exp %16 : vector<1x32xf32>
    %cst_9 = arith.constant 1.000000e+00 : f32
    %18 = vector.broadcast %cst_9 : f32 to vector<1x32xf32>
    %19 = arith.addf %18, %17 : vector<1x32xf32>
    %20 = arith.divf %18, %19 : vector<1x32xf32>
    %21 = vector.shape_cast %20 : vector<1x32xf32> to vector<1x1x32xf32>
    %c0_10 = arith.constant 0 : index
    %c0_11 = arith.constant 0 : index
    %c0_12 = arith.constant 0 : index
    %22 = vector.load %arg5[%c0_10, %c0_11, %c0_12] : memref<1x1x32xf32, #tpu.memory_space<vmem>>, vector<1x1x32xf32>
    tpu.vector_store %arg5[%c0_10, %c0_11, %c0_12], %21 {strides = array<i32>} : memref<1x1x32xf32, #tpu.memory_space<vmem>>, vector<1x1x32xf32>,
    return
  }
  func.func @transform_0(%arg0: i32, %arg1: i32) -> (i32, i32, i32) {
    %c0_i32 = arith.constant 0 : i32
    %c0_i32_0 = arith.constant 0 : i32
    return %arg0, %c0_i32, %arg1 : i32, i32, i32
  }
  func.func @transform_1(%arg0: i32, %arg1: i32) -> (i32, i32) {
    %c0_i32 = arith.constant 0 : i32
    %c0_i32_0 = arith.constant 0 : i32
    %c0_i32_1 = arith.constant 0 : i32
    return %c0_i32, %c0_i32_0 : i32, i32
  }
  func.func @transform_2(%arg0: i32, %arg1: i32) -> (i32, i32) {
    %c0_i32 = arith.constant 0 : i32
    %c0_i32_0 = arith.constant 0 : i32
    %c0_i32_1 = arith.constant 0 : i32
    return %c0_i32, %c0_i32_0 : i32, i32
  }
  func.func @transform_3(%arg0: i32, %arg1: i32) -> (i32, i32, i32) {
    %c0_i32 = arith.constant 0 : i32
    %c0_i32_0 = arith.constant 0 : i32
    %c0_i32_1 = arith.constant 0 : i32
    return %arg0, %c0_i32, %c0_i32_0 : i32, i32, i32
  }
}

</mosaic_0001>

<bundles_post_ra>
// kernel: channel_attention.1
= control target key start
LH: loop header
LB: loop body
LE: loop exit
PB: predicated region body
PF: predicated region fallthrough
CT: control target
= control target key end

     0   :  { %8 = vsyncpa [#allocation4], 0  ;;  %s751_s0 = inlined_call_operand.vmem [shape: f32[2,32,256], index: 0, kind: input, shape index: {}]   ;;  %s752_s1 = inlined_call_operand.vmem [shape: f32[2,32], index: 1, kind: input, shape index: {}]   ;;  %s753_s2 = inlined_call_operand.vmem [shape: f32[2,32], index: 2, kind: input, shape index: {}]   ;;  %s754_s3 = inlined_call_operand.hbm [shape: f32[2,1,32], index: 3, kind: output, shape index: {}]  }
   0x1   :  { %10 = vsyncpa [#allocation4 + $0x1], 0  ;;  %s633_s12 = smov 0   ;;  %s635_s13 = smov 0  }
   0x2   :  { %s637_s14 = smov 0   ;;  %s639_s15 = smov 0  }
   0x3   :  { %s641_s16 = smov 0   ;;  %s643_s17 = smov 0  }
   0x4 LB: > { %s457_s18 = sadd.s32 4294967295, %s609_s17   ;;  %s458_s19 = sadd.s32 4294967294, %s609_s17   ;;  %s609_s17 = sphi %s643_s17, %s16_s17   ;;  %s605_s16 = sphi %s641_s16, %s761_s16   ;;  %s601_s15 = sphi %s639_s15, %s760_s15   ;;  %s597_s14 = sphi %s637_s14, %s759_s14   ;;  %s593_s13 = sphi %s635_s13, %s758_s13   ;;  %s589_s12 = sphi %s633_s12, %s757_s12  }
   0x5   : > { %s28_s20 = sadd.s32 1, %s605_s16  ;;  %s105_s21 = sadd.s32 1, %s597_s14 }
   0x6   : > { %p30_p0 = scmp.ge.s32.totalorder %s28_s20, 2  ;;  %p115_p1 = scmp.ne.s32.totalorder %s597_s14, %s593_s13 }
   0x7   : > { %p116_p2 = scmp.eq.s32.totalorder %s457_s18, 1  ;;  %p121_p3 = scmp.ne.s32.totalorder %s593_s13, %s589_s12 }
   0x8   : > { %s763_s20 = smov (%p30_p0, %s28_s20), 0  ;;  %p122_p5 = scmp.eq.s32.totalorder %s458_s19, 1 }
   0x9   : > { %p673_p4 = por %p116_p2, %p115_p1  ;;  %s102_s23 = ssub.s32 %s605_s16, %s763_s20 }
   0xa   : > { %p461_p6 = scmp.ge.s32.totalorder %s609_s17, 1  ;;  %p103_p7 = scmp.eq.s32.totalorder %s102_s23, 0 }
   0xb   : > { %p680_p8 = por %p122_p5, %p121_p3  ;;  %p159_p9 = scmp.lt.s32.totalorder %s609_s17, 3 }
   0xc   : > { %s686_s25 = scalar_select %p103_p7, %s597_s14, %s105_s21  }
   0xd   : > { %p160_p10 = pnand %p461_p6, %p159_p9 }
   0xe   : > { %p187_p11 = scmp.lt.s32.totalorder (!%p160_p10), %s601_s15, 1  ;;  %v219_v12 = vlaneseq (!%p160_p10)  ;;  %v216_v15 = vld [vmem:[%s752_s1] sm:$0x3] (!%p160_p10)  ;;  %v611_v19 = vmov (!%p160_p10), 0   ;;  %vm316_vm0 = vcmask (!%p160_p10), 130112   ;;  %vm323_vm1 = vcmask (!%p160_p10), 195712  }
   0xf   : > { %163 = sbr.rel (%p160_p10) target bundleno = 529 (0x211), region = 32  ;;  %526 = vset.pattern.permute.xlu1 (!%p160_p10), %v611_v19  ;;  %525 = vset.pattern.permute.xlu0 (!%p160_p10), %v611_v19  ;;  %vm330_vm2 = vcmask (!%p160_p10), 261312   ;;  %vm351_vm3 = vcmask (!%p160_p10), 1041409   ;;  %vm354_vm4 = vcmask (!%p160_p10), 254976   ;;  %s184_s8 = sand.u32 (!%p160_p10), 1, %s593_s13   ;;  %vm373_vm5 = vcmask (!%p160_p10), 253952  }
  0x10   : > { %v220_v13 = vshrl.u32 (!%p160_p10), %v219_v12, 7  ;;  %v306_v41 = vand.u32 (!%p160_p10), 127, %v219_v12  ;;  %s465_s9 = sshll.u32 (!%p160_p10), %s601_s15, 4  ;;  %s185_s10 = scalar_lea.vmem (!%p160_p10), [#allocation3], %s184_s8 }
  0x11   : > { %s388_s11 = sshll.u32 (!%p160_p10), %s185_s10, 4  ;;  %s704_s21 = scalar_lea.hbm (!%p160_p10), %s754_s3, %s465_s9  ;;  %s706_s11 = int_to_ptr.vmem [resolvable:$true] %s388_s11 }
  0x12   : > { %v221_v14 = vsub.s32 (!%p160_p10), 0, %v220_v13  ;;  %v240_v17 = vsub.s32 (!%p160_p10), 1, %v220_v13  ;;  %v311_v44 = vadd.s32 (!%p160_p10), 4294967288, %v306_v41  ;;  %v318_v45 = vadd.s32 (!%p160_p10), 4294967280, %v306_v41  ;;  %s376_s23 = scalar_lea.sflag (!%p160_p10), [#allocation4], %s184_s8 }
  0x13   : > { %v325_v46 = vadd.s32 (!%p160_p10), 4294967272, %v306_v41  ;;  %v309_v50 = vsub.s32 (!%p160_p10), %v306_v41, %v220_v13 }
  0x14   : > { %v222_v16 = vrot.slane (!%p160_p10), %v216_v15, %v221_v14  ;;  %v241_v18 = vrot.slane (!%p160_p10), %v216_v15, %v240_v17  ;;  %v314_v49 = vsub.s32 (!%p160_p10), %v311_v44, %v220_v13  ;;  %v321_v51 = vsub.s32 (!%p160_p10), %v318_v45, %v220_v13 }
  0x15   : > { %v328_v52 = vsub.s32 (!%p160_p10), %v325_v46, %v220_v13 }
  0x16   : > { %s188_s26 = scalar_select %p187_p11, %s601_s15, 1 }
  0x17   : > { %s612_s15 = smov [#allocation3]  }
  0x18   : > { %s468_s27 = sshll.u32 %s188_s26, 6  ;;  %s531_s26 = scalar_lea.vmem %s706_s11, 16 }
  0x19   : > { %s194_s30 = scalar_lea.vmem %s751_s0, %s468_s27  ;;  %p532_p12 = scmp.ne.s32.totalorder %s706_s11, %s531_s26 }
  0x1a   : > { %v200_v0 = vld [vmem:[%s194_s30 + $0x20] sm:$0xff]  ;;  %v201_v1 = vld [vmem:[%s194_s30 + $0x28] sm:$0xff]  ;;  %v202_v5 = vld [vmem:[%s194_s30 + $0x30] sm:$0xff]  ;;  %s535_s27 = sshll.u32 %s612_s15, 4  ;;  %s536_s27 = int_to_ptr.vmem [resolvable:$false] %s535_s27 }
  0x1b   : > { %v196_v2 = vld [vmem:[%s194_s30] sm:$0xff]  ;;  %v210_v3 = vmax.f32 %v200_v0, %v201_v1  ;;  %v197_v4 = vld [vmem:[%s194_s30 + $0x8] sm:$0xff]  ;;  %v203_v6 = vld [vmem:[%s194_s30 + $0x38] sm:$0xff]  ;;  %p533_p13 = pnand %p532_p12, %p673_p4  ;;  %s537_s28 = scalar_lea.vmem %s536_s27, 32 }
  0x1c   : > { %v204_v7 = vmax.f32 %v196_v2, %v197_v4  ;;  %v198_v8 = vld [vmem:[%s194_s30 + $0x10] sm:$0xff]  ;;  %v199_v9 = vld [vmem:[%s194_s30 + $0x18] sm:$0xff]  ;;  %v213_v10 = vmax.f32 %v202_v5, %v203_v6  ;;  %p538_p1 = scmp.lt.s32.totalorder %s706_s11, %s536_s27  ;;  %p539_p2 = scmp.lt.s32.totalorder %s537_s28, %s531_s26 }
  0x1d   : > { %211 = vmax.xlane.f32.xlu1 %v210_v3  ;;  %v207_v11 = vmax.f32 %v198_v8, %v199_v9  ;;  %v217_v8 = vld [vmem:[%s753_s2] sm:$0x3]  ;;  %p534_p0 = pneg %p533_p13 }
  0x1e   : > { %205 = vmax.xlane.f32.xlu0 %v204_v7  ;;  %p540_p3 = por %p539_p2, %p538_p1 }
  0x20   : > { %p541_p5 = pnand %p540_p3, %p534_p0 }
  0x21   : > { %214 = vmax.xlane.f32.xlu1 %v213_v10 }
  0x22   : > { %208 = vmax.xlane.f32.xlu0 %v207_v11 }
  0x32   : > { %228 = vbcast.lane.b32.xlu1 %v222_v16, 264 }
  0x36   : > { %243 = vbcast.lane.b32.xlu1 %v241_v18, 256 }
  0x38   : > { %224 = vbcast.lane.b32.xlu0 %v222_v16, 256 }
  0x3a   : > { %247 = vbcast.lane.b32.xlu1 %v241_v18, 264 }
  0x3c   : > { %232 = vbcast.lane.b32.xlu0 %v222_v16, 272 }
  0x3e   : > { %251 = vbcast.lane.b32.xlu1 %v241_v18, 272 }
  0x40   : > { %236 = vbcast.lane.b32.xlu0 %v222_v16, 280 }
  0x42   : > { %255 = vbcast.lane.b32.xlu1 %v241_v18, 280 }
  0xaa   : > { %v212_v20 = vpop.xlane.xlu1 %211 }
  0xab   : > { %v206_v21 = vpop.xlane.xlu0 %205 }
  0xae   : > { %v215_v22 = vpop.xlane.xlu1 %214 }
  0xaf   : > { %v209_v23 = vpop.xlane.xlu0 %208 }
  0xb2   : > { %v229_v24 = vpop.permute.xlu1 %228 }
  0xb3   : > { %v266_v25 = vmul.f32 %v229_v24, %v209_v23  ;;  %v225_v26 = vpop.permute.xlu0 %224 }
  0xb4   : > { %v265_v27 = vmul.f32 %v225_v26, %v206_v21 }
  0xb5   : > { %285 = vperm.xlu1 %526, %v266_v25  }
  0xb6   : > { %282 = vperm.xlu0 %525, %v265_v27   ;;  %v244_v28 = vpop.permute.xlu1 %243 }
  0xb7   : > { %v269_v29 = vmul.f32 %v244_v28, %v206_v21  ;;  %v233_v30 = vpop.permute.xlu0 %232 }
  0xb8   : > { %v267_v32 = vmul.f32 %v233_v30, %v212_v20 }
  0xb9   : > { %294 = vperm.xlu1 %526, %v269_v29  }
  0xba   : > { %v248_v31 = vpop.permute.xlu1 %247 }
  0xbb   : > { %v270_v33 = vmul.f32 %v248_v31, %v209_v23  ;;  %v237_v34 = vpop.permute.xlu0 %236 }
  0xbc   : > { %v268_v36 = vmul.f32 %v237_v34, %v215_v22 }
  0xbd   : > { %297 = vperm.xlu0 %525, %v270_v33   ;;  %288 = vperm.xlu1 %526, %v267_v32  }
  0xbe   : > { %v252_v35 = vpop.permute.xlu1 %251 }
  0xbf   : > { %v271_v37 = vmul.f32 %v252_v35, %v212_v20 }
  0xc1   : > { %300 = vperm.xlu0 %525, %v271_v37   ;;  %291 = vperm.xlu1 %526, %v268_v36  }
  0xc2   : > { %v256_v38 = vpop.permute.xlu1 %255 }
  0xc3   : > { %v272_v39 = vmul.f32 %v256_v38, %v215_v22 }
  0xc5   : > { %303 = vperm.xlu0 %525, %v272_v39  }
 0x134   : > { %v286_v40 = vpop.permute.xlu1 %285 }
 0x135   : > { %v283_v42 = vpop.permute.xlu0 %282  ;;  %v315_v55 = vrot.slane %v286_v40, %v314_v49 }
 0x136   : > { %v310_v56 = vrot.slane %v283_v42, %v309_v50 }
 0x138   : > { %v295_v43 = vpop.permute.xlu1 %294  ;;  %v317_v63 = vsel %vm316_vm0, %v315_v55, %v310_v56 }
 0x139   : > { %v335_v60 = vrot.slane %v295_v43, %v309_v50 }
 0x13c   : > { %v289_v47 = vpop.permute.xlu1 %288  ;;  %v298_v48 = vpop.permute.xlu0 %297 }
 0x13d   : > { %v339_v57 = vrot.slane %v298_v48, %v314_v49  ;;  %v322_v58 = vrot.slane %v289_v47, %v321_v51 }
 0x13f   : > { %v340_v0 = vsel %vm316_vm0, %v339_v57, %v335_v60  ;;  %v324_v2 = vsel %vm323_vm1, %v322_v58, %v317_v63 }
 0x140   : > { %v292_v53 = vpop.permute.xlu1 %291  ;;  %v301_v54 = vpop.permute.xlu0 %300 }
 0x141   : > { %v344_v59 = vrot.slane %v301_v54, %v321_v51  ;;  %v329_v61 = vrot.slane %v292_v53, %v328_v52 }
 0x143   : > { %v345_v3 = vsel %vm323_vm1, %v344_v59, %v340_v0  ;;  %v331_v4 = vsel %vm330_vm2, %v329_v61, %v324_v2 }
 0x144   : > { %v304_v62 = vpop.permute.xlu0 %303 }
 0x145   : > { %v349_v1 = vrot.slane %v304_v62, %v328_v52 }
 0x147   : > { %v350_v5 = vsel %vm330_vm2, %v349_v1, %v345_v3 }
 0x148   : > { %v352_v6 = vsel %vm351_vm3, %v350_v5, %v331_v4 }
 0x149   : > { %v355_v7 = vsel %vm354_vm4, %v352_v6, 0.0 }
 0x14a   : > { %356 = vadd.xlane.f32.xlu1 %v355_v7 }
 0x1d7   : > { %v357_v9 = vpop.xlane.xlu1 %356 }
 0x1d8   : > { %v358_v10 = vmax.f32 %v357_v9, 0.0 }
 0x1da   : > { %v359_v11 = vmul.f32 %v358_v10, %v217_v8 }
 0x1dc   : > { %v360_v12 = vsel %vm354_vm4, %v359_v11, 0.0 }
 0x1dd   : > { %v361_v13 = vrot.slane %v360_v12, 4 }
 0x1df   : > { %v362_v14 = vadd.f32 %v361_v13, %v360_v12 }
 0x1e1   : > { %v363_v15 = vrot.slane %v362_v14, 2 }
 0x1e3   : > { %v364_v16 = vadd.f32 %v363_v15, %v362_v14 }
 0x1e5   : > { %v365_v17 = vrot.slane %v364_v16, 1 }
 0x1e7   : > { %v366_v18 = vadd.f32 %v365_v17, %v364_v16 }
 0x1e9   : > { %v464_v19 = vmul.f32 -1.442695, %v366_v18 }
 0x1eb   : > { %527 = vpow2.f32 %v464_v19 }
 0x1f5   : > { %v528_v20 = vpop.eup %527 }
 0x1f6   : > { %v370_v21 = vadd.f32 1.0, %v528_v20 }
 0x1f8   : > { %529 = vrcp.f32 %v370_v21 }
 0x202   : > { %v530_v22 = vpop.eup %529 }
 0x203   : > { %374 = vst.msk [vmem:[%s185_s10] sm:$0x1] %vm373_vm5, %v530_v22 }
 0x204   : > { %544 = shalt.err (!%p541_p5)
}
 0x205   : > { %s545_s29 = scalar_lea.hbm %s704_s21, 16  ;;  %s549_s5 = scalar_lea.hbm %s754_s3, 32 }
 0x206   : > { %p546_p6 = scmp.ne.s32.totalorder %s704_s21, %s545_s29  ;;  %p550_p10 = scmp.lt.u32.totalorder %s704_s21, %s754_s3 }
 0x207   : > { %p551_p11 = scmp.lt.u32.totalorder %s549_s5, %s545_s29  ;;  %p553_p13 = scmp.lt.u32.totalorder %s545_s29, %s704_s21 }
 0x208   : > { %p547_p7 = pnand %p546_p6, %p673_p4 }
 0x209   : > { %p552_p12 = por %p551_p11, %p550_p10 }
 0x20a   : > { %p548_p9 = pneg %p547_p7 }
 0x20b   : > { %p554_p0 = por %p553_p13, %p552_p12 }
 0x20d   : > { %p555_p1 = pnand %p554_p0, %p548_p9 }
 0x20f   : > { %558 = shalt.err (!%p555_p1)
}
 0x210   : > { %469 = dma.vmem_to_hbm [thread:$0]  (%p673_p4), %s706_s11, 16, %s704_s21, %s376_s23  }
 0x211 PF: > { %p475_p2 = scmp.ge.s32.totalorder %s609_s17, 2  ;;  %s400_s8 = sand.u32 1, %s589_s12  }
 0x212   : > { %s401_s9 = scalar_lea.sflag [#allocation4], %s400_s8 }
 0x213   : > { %p472_p3 = pnand %p475_p2, %p680_p8 }
 0x215   : > { %584 = dma.done.wait (!%p472_p3), %s401_s9, 16  }
 0x216   : > { %586 = vsyncadd (!%p472_p3), %s401_s9, 4294967280  ;;  %s16_s17 = sadd.s32 1, %s609_s17   ;;  %s757_s12 = smov %s593_s13 }
 0x217   : > { %p13_p5 = scmp.ge.s32.totalorder %s16_s17, 4   ;;  %s758_s13 = smov %s597_s14 }
 0x218   : > { %s759_s14 = smov %s686_s25  ;;  %s760_s15 = smov %s605_s16 }
 0x219   : > { %s761_s16 = smov %s763_s20  ;;  %15 = sbr.rel (!%p13_p5) target bundleno = 4 (0x4), region = 67 }
 0x220   :  { %405 = vsyncpa [#allocation4], 1 }
 0x221   :  { %407 = vsyncpa [#allocation4 + $0x1], 1 }

</bundles_post_ra>
